<compile_context>
chip_gen: v7x
topology: tpu7x:2x2x1
jax: 0.10.0
libtpu: 0.0.40
codegen_flags: <defaults>
</compile_context>

<pallas_src>
import jax
import jax.numpy as jnp
from jax.experimental import pallas as pl
from jax.experimental.pallas import tpu as pltpu

LANES = 128
HIDDEN = 4


def _round_up(n, m):
    return ((n + m - 1) // m) * m


def mlp_kernel(params_ref, x_ref, o_ref):
    # params_ref: SMEM f32[13] = [0.5*w1_0..3, 0.5*b1_0..3, 0.5*w2_0..3, b2+0.5*sum(w2)]
    # x_ref / o_ref: VMEM (block_rows, 128) lane-dense batch tiles.
    x = x_ref[...]
    acc = jnp.full_like(x, params_ref[3 * HIDDEN])       # b2 + 0.5*sum(w2)
    for h in range(HIDDEN):                               # unrolled: 4 FMA + tanh chains
        a = params_ref[h]                                 # 0.5 * w1[h]
        c = params_ref[HIDDEN + h]                        # 0.5 * b1[h]
        d = params_ref[2 * HIDDEN + h]                    # 0.5 * w2[h]
        acc = acc + d * jnp.tanh(x * a + c)               # tanh on the EUP slot
    o_ref[...] = acc


def _pack_params(l1_w, l1_b, l2_w, l2_b):
    """Fold the sigmoid->tanh rewrite constants into 13 packed scalars."""
    w1 = l1_w.reshape(-1).astype(jnp.float32)             # (4,)
    b1 = l1_b.reshape(-1).astype(jnp.float32)             # (4,)
    w2 = l2_w.reshape(-1).astype(jnp.float32)             # (4,)
    b2 = l2_b.reshape(-1).astype(jnp.float32)             # (1,)
    a = 0.5 * w1
    c = 0.5 * b1
    d = 0.5 * w2
    e = b2 + jnp.sum(d)                                   # b2 + 0.5*sum(w2), shape (1,)
    return jnp.concatenate([a, c, d, e])                  # (13,)


def neural_network_forward(x, l1_w, l1_b, l2_w, l2_b, *, max_block_rows=2048):
    """Forward pass of the 1->4->1 MLP (same math as the PyTorch module).

    x: (B, 1) float32
    l1_w: (4, 1), l1_b: (4,), l2_w: (1, 4), l2_b: (1,)   (PyTorch parameter layout)
    returns: (B, 1) float32
    """
    B = x.shape[0]
    params = _pack_params(l1_w, l1_b, l2_w, l2_b)

    # ---- balanced lane-dense blocking ------------------------------------------
    rows_needed = max(1, pl.cdiv(B, LANES))
    num_blocks = pl.cdiv(rows_needed, max_block_rows)
    if rows_needed >= 16:
        num_blocks = max(num_blocks, 2)        # keep >=2 parallel blocks for v7x's 2 TCs
    block_rows = _round_up(pl.cdiv(rows_needed, num_blocks), 8)
    padded_rows = num_blocks * block_rows
    total_elems = padded_rows * LANES

    # ---- lane-dense view of the batch (copy-free when already aligned) ----------
    x_flat = x.reshape(-1).astype(jnp.float32)             # reshape is free
    if total_elems != B:
        x_flat = jnp.pad(x_flat, (0, total_elems - B))     # only on the unaligned path
    x2d = x_flat.reshape(padded_rows, LANES)                # free

    cost = pl.CostEstimate(
        flops=16 * total_elems,                 # 4 x (FMA in + FMA out) per element
        transcendentals=HIDDEN * total_elems,   # one tanh per hidden unit per element
        bytes_accessed=2 * 4 * total_elems,     # read x + write out, f32
    )

    out2d = pl.pallas_call(
        mlp_kernel,
        out_shape=jax.ShapeDtypeStruct((padded_rows, LANES), jnp.float32),
        grid=(num_blocks,),
        in_specs=[
            pl.BlockSpec(memory_space=pltpu.MemorySpace.SMEM),    # 13 packed scalars
            pl.BlockSpec((block_rows, LANES), lambda i: (i, 0)),  # x tile
        ],
        out_specs=pl.BlockSpec((block_rows, LANES), lambda i: (i, 0)),
        compiler_params=pltpu.CompilerParams(
            dimension_semantics=("parallel",),
        ),
        cost_estimate=cost,
    )(params, x2d)

    out_flat = out2d.reshape(-1)                            # free
    if total_elems != B:
        out_flat = out_flat[:B]                             # only on the unaligned path
    return out_flat.reshape(B, 1)                           # free


if __name__ == "__main__":
    key = jax.random.PRNGKey(0)
    k_x, k_x2, k_x3, k1, k2, k3, k4 = jax.random.split(key, 7)

    # PyTorch-layout parameters (deterministic).
    l1_w = jax.random.uniform(k1, (4, 1), jnp.float32, -1.0, 1.0)   # layer1.weight
    l1_b = jax.random.uniform(k2, (4,), jnp.float32, -1.0, 1.0)     # layer1.bias
    l2_w = jax.random.uniform(k3, (1, 4), jnp.float32, -0.5, 0.5)   # layer2.weight
    l2_b = jax.random.uniform(k4, (1,), jnp.float32, -0.5, 0.5)     # layer2.bias

    def _reference(x):
        hid = jax.nn.sigmoid(x @ l1_w.T + l1_b)
        return hid @ l2_w.T + l2_b

    fwd = jax.jit(neural_network_forward)

    # Small batch (single tiny padded block).
    x_small = jax.random.normal(k_x, (8, 1), jnp.float32)
    out_small = jax.block_until_ready(fwd(x_small, l1_w, l1_b, l2_w, l2_b))
    assert out_small.shape == (8, 1)
    assert jnp.allclose(out_small, _reference(x_small), atol=1e-4, rtol=1e-4)

    # Lane/block-aligned batch: copy-free wrapper path, 2 parallel 1024-row blocks.
    x_big = jax.random.normal(k_x2, (262_144, 1), jnp.float32)
    out_big = jax.block_until_ready(fwd(x_big, l1_w, l1_b, l2_w, l2_b))
    assert out_big.shape == (262_144, 1)
    assert jnp.allclose(out_big, _reference(x_big), atol=1e-4, rtol=1e-4)

    # Unaligned batch: balanced blocks, <1% padding slack (was ~31%).
    x_odd = jax.random.normal(k_x3, (200_000, 1), jnp.float32)
    out_odd = jax.block_until_ready(fwd(x_odd, l1_w, l1_b, l2_w, l2_b))
    assert out_odd.shape == (200_000, 1)
    assert jnp.allclose(out_odd, _reference(x_odd), atol=1e-4, rtol=1e-4)

    print("KERNEL_OK")
</pallas_src>

<mosaic_0001>
module attributes {stable_mosaic.version = 11 : i64} {
  func.func @mlp_kernel(%arg0: i32, %arg1: memref<13xf32, #tpu.memory_space<smem>>, %arg2: memref<8x128xf32, #tpu.memory_space<vmem>>, %arg3: memref<8x128xf32, #tpu.memory_space<vmem>>) attributes {dimension_semantics = [#tpu.dimension_semantics<parallel>], iteration_bounds = array<i64: 1>, scalar_prefetch = 0 : i64, scratch_operands = 0 : i64, tpu.core_type = #tpu.core_type<tc>, window_params = [{transform_indices = @transform_0, window_bounds = array<i64: 13>}, {transform_indices = @transform_1, window_bounds = array<i64: 8, 128>}, {transform_indices = @transform_2, window_bounds = array<i64: 8, 128>}]} {
    %c0 = arith.constant 0 : index
    %c0_0 = arith.constant 0 : index
    %0 = vector.load %arg2[%c0, %c0_0] : memref<8x128xf32, #tpu.memory_space<vmem>>, vector<8x128xf32>
    %c12 = arith.constant 12 : index
    %1 = memref.load %arg1[%c12] : memref<13xf32, #tpu.memory_space<smem>>
    %2 = vector.broadcast %1 : f32 to vector<8x128xf32>
    %c0_1 = arith.constant 0 : index
    %3 = memref.load %arg1[%c0_1] : memref<13xf32, #tpu.memory_space<smem>>
    %c4 = arith.constant 4 : index
    %4 = memref.load %arg1[%c4] : memref<13xf32, #tpu.memory_space<smem>>
    %c8 = arith.constant 8 : index
    %5 = memref.load %arg1[%c8] : memref<13xf32, #tpu.memory_space<smem>>
    %6 = vector.broadcast %3 : f32 to vector<8x128xf32>
    %7 = arith.mulf %0, %6 : vector<8x128xf32>
    %8 = vector.broadcast %4 : f32 to vector<8x128xf32>
    %9 = arith.addf %7, %8 : vector<8x128xf32>
    %10 = math.tanh %9 : vector<8x128xf32>
    %11 = vector.broadcast %5 : f32 to vector<8x128xf32>
    %12 = arith.mulf %11, %10 : vector<8x128xf32>
    %13 = arith.addf %2, %12 : vector<8x128xf32>
    %c1 = arith.constant 1 : index
    %14 = memref.load %arg1[%c1] : memref<13xf32, #tpu.memory_space<smem>>
    %c5 = arith.constant 5 : index
    %15 = memref.load %arg1[%c5] : memref<13xf32, #tpu.memory_space<smem>>
    %c9 = arith.constant 9 : index
    %16 = memref.load %arg1[%c9] : memref<13xf32, #tpu.memory_space<smem>>
    %17 = vector.broadcast %14 : f32 to vector<8x128xf32>
    %18 = arith.mulf %0, %17 : vector<8x128xf32>
    %19 = vector.broadcast %15 : f32 to vector<8x128xf32>
    %20 = arith.addf %18, %19 : vector<8x128xf32>
    %21 = math.tanh %20 : vector<8x128xf32>
    %22 = vector.broadcast %16 : f32 to vector<8x128xf32>
    %23 = arith.mulf %22, %21 : vector<8x128xf32>
    %24 = arith.addf %13, %23 : vector<8x128xf32>
    %c2 = arith.constant 2 : index
    %25 = memref.load %arg1[%c2] : memref<13xf32, #tpu.memory_space<smem>>
    %c6 = arith.constant 6 : index
    %26 = memref.load %arg1[%c6] : memref<13xf32, #tpu.memory_space<smem>>
    %c10 = arith.constant 10 : index
    %27 = memref.load %arg1[%c10] : memref<13xf32, #tpu.memory_space<smem>>
    %28 = vector.broadcast %25 : f32 to vector<8x128xf32>
    %29 = arith.mulf %0, %28 : vector<8x128xf32>
    %30 = vector.broadcast %26 : f32 to vector<8x128xf32>
    %31 = arith.addf %29, %30 : vector<8x128xf32>
    %32 = math.tanh %31 : vector<8x128xf32>
    %33 = vector.broadcast %27 : f32 to vector<8x128xf32>
    %34 = arith.mulf %33, %32 : vector<8x128xf32>
    %35 = arith.addf %24, %34 : vector<8x128xf32>
    %c3 = arith.constant 3 : index
    %36 = memref.load %arg1[%c3] : memref<13xf32, #tpu.memory_space<smem>>
    %c7 = arith.constant 7 : index
    %37 = memref.load %arg1[%c7] : memref<13xf32, #tpu.memory_space<smem>>
    %c11 = arith.constant 11 : index
    %38 = memref.load %arg1[%c11] : memref<13xf32, #tpu.memory_space<smem>>
    %39 = vector.broadcast %36 : f32 to vector<8x128xf32>
    %40 = arith.mulf %0, %39 : vector<8x128xf32>
    %41 = vector.broadcast %37 : f32 to vector<8x128xf32>
    %42 = arith.addf %40, %41 : vector<8x128xf32>
    %43 = math.tanh %42 : vector<8x128xf32>
    %44 = vector.broadcast %38 : f32 to vector<8x128xf32>
    %45 = arith.mulf %44, %43 : vector<8x128xf32>
    %46 = arith.addf %35, %45 : vector<8x128xf32>
    %c0_2 = arith.constant 0 : index
    %c0_3 = arith.constant 0 : index
    %47 = vector.load %arg3[%c0_2, %c0_3] : memref<8x128xf32, #tpu.memory_space<vmem>>, vector<8x128xf32>
    tpu.vector_store %arg3[%c0_2, %c0_3], %46 {strides = array<i32>} : memref<8x128xf32, #tpu.memory_space<vmem>>, vector<8x128xf32>,
    return
  }
  func.func @transform_0(%arg0: i32) -> i32 {
    %c0_i32 = arith.constant 0 : i32
    %c0_i32_0 = arith.constant 0 : i32
    return %c0_i32 : i32
  }
  func.func @transform_1(%arg0: i32) -> (i32, i32) {
    %c0_i32 = arith.constant 0 : i32
    %c0_i32_0 = arith.constant 0 : i32
    return %arg0, %c0_i32 : i32, i32
  }
  func.func @transform_2(%arg0: i32) -> (i32, i32) {
    %c0_i32 = arith.constant 0 : i32
    %c0_i32_0 = arith.constant 0 : i32
    return %arg0, %c0_i32 : i32, i32
  }
}

</mosaic_0001>

<bundles_post_ra>
// kernel: neural_network_forward.1
= control target key start
LH: loop header
LB: loop body
LE: loop exit
PB: predicated region body
PF: predicated region fallthrough
CT: control target
= control target key end

     0   :  { %7 = vsyncpa [#allocation3], 0  ;;  %s137_s0 = inlined_call_operand.vmem [shape: f32[13], index: 0, kind: input, shape index: {}]   ;;  %s138_s1 = inlined_call_operand.vmem [shape: f32[8,128], index: 1, kind: input, shape index: {}]   ;;  %s139_s2 = inlined_call_operand.vmem [shape: f32[8,128], index: 2, kind: output, shape index: {}]  }
   0x1   :  { %s14_s11 = sshll.u32 %s137_s0, 4  ;;  %s15_s11 = int_to_ptr.vmem [resolvable:$true] %s14_s11 }
   0x2   :  { %s98_s12 = scalar_lea.vmem %s15_s11, 16  ;;  %p103_p1 = scmp.lt.s32.totalorder %s15_s11, %s15_s11 }
   0x3   :  { %p99_p0 = scmp.ne.s32.totalorder %s15_s11, %s98_s12  ;;  %p104_p2 = scmp.lt.s32.totalorder %s98_s12, %s98_s12 }
   0x5   :  { %p105_p3 = por %p104_p2, %p103_p1 }
   0x7   :  { %p106_p4 = pnand %p105_p3, %p99_p0 }
   0x9   :  { %109 = shalt.err (!%p106_p4)
}
   0xa   :  { %s112_s13 = smov [#allocation2]  }
   0xb   :  { %17 = dma.vmem_to_smem %s15_s11, 16, %s112_s13, [#allocation3]  }
   0xc   :  { %110 = dma.done.wait [#allocation3], 16  }
   0xd   :  { %111 = vsyncadd [#allocation3], 4294967280 }
   0xe   :  { %23 = sfence }
   0xf   :  { %s27_s14 = sld [smem:[#allocation2]]  ;;  %s78_s15 = sld [smem:[#allocation2 + $0x4]]  ;;  %v24_v0 = vld [vmem:[%s138_s1] sm:$0xff] }
  0x10   :  { %s80_s16 = sld [smem:[#allocation2 + $0x1]]  ;;  %s81_s17 = sld [smem:[#allocation2 + $0x5]] }
  0x11   :  { %s83_s18 = sld [smem:[#allocation2 + $0x2]]  ;;  %s84_s20 = sld [smem:[#allocation2 + $0x6]] }
  0x12   :  { %s86_s21 = sld [smem:[#allocation2 + $0x3]]  ;;  %s87_s22 = sld [smem:[#allocation2 + $0x7]] }
  0x13   :  { %s79_s23 = sld [smem:[#allocation2 + $0x8]]  ;;  %s77_s1 = sld [smem:[#allocation2 + $0xc]] }
  0x14   :  { %s82_s24 = sld [smem:[#allocation2 + $0x9]]  ;;  %s85_s25 = sld [smem:[#allocation2 + $0xa]] }
  0x15   :  { %v30_v1 = vstv %s27_s14  ;;  %v32_v3 = vstv %s78_s15  ;;  %s88_s26 = sld [smem:[#allocation2 + $0xb]] }
  0x16   :  { %v31_v2 = vmul.f32 %v30_v1, %v24_v0  ;;  %v41_v4 = vstv %s80_s16  ;;  %v43_v5 = vstv %s81_s17 }
  0x17   :  { %v42_v7 = vmul.f32 %v41_v4, %v24_v0  ;;  %v52_v8 = vstv %s83_s18  ;;  %v54_v10 = vstv %s84_s20 }
  0x18   :  { %v33_v6 = vadd.f32 %v32_v3, %v31_v2  ;;  %v53_v9 = vmul.f32 %v52_v8, %v24_v0  ;;  %v63_v12 = vstv %s86_s21  ;;  %v65_v13 = vstv %s87_s22 }
  0x19   :  { %v44_v11 = vadd.f32 %v43_v5, %v42_v7  ;;  %v64_v15 = vmul.f32 %v63_v12, %v24_v0  ;;  %v35_v17 = vstv %s79_s23  ;;  %v26_v19 = vstv %s77_s1 }
  0x1a   :  { %90 = vtanh.f32 %v33_v6  ;;  %v55_v14 = vadd.f32 %v54_v10, %v53_v9  ;;  %v46_v20 = vstv %s82_s24  ;;  %v57_v22 = vstv %s85_s25 }
  0x1b   :  { %92 = vtanh.f32 %v44_v11  ;;  %v66_v16 = vadd.f32 %v65_v13, %v64_v15  ;;  %v68_v27 = vstv %s88_s26 }
  0x1c   :  { %94 = vtanh.f32 %v55_v14 }
  0x1d   :  { %96 = vtanh.f32 %v66_v16 }
  0x24   :  { %v91_v18 = vpop.eup %90 }
  0x25   :  { %v36_v21 = vmul.f32 %v91_v18, %v35_v17  ;;  %v93_v23 = vpop.eup %92 }
  0x26   :  { %v95_v24 = vpop.eup %94  ;;  %v47_v26 = vmul.f32 %v93_v23, %v46_v20 }
  0x27   :  { %v37_v25 = vadd.f32 %v36_v21, %v26_v19  ;;  %v58_v28 = vmul.f32 %v95_v24, %v57_v22  ;;  %v97_v29 = vpop.eup %96 }
  0x28   :  { %v69_v31 = vmul.f32 %v97_v29, %v68_v27 }
  0x29   :  { %v48_v30 = vadd.f32 %v47_v26, %v37_v25 }
  0x2b   :  { %v59_v32 = vadd.f32 %v58_v28, %v48_v30 }
  0x2d   :  { %v70_v33 = vadd.f32 %v69_v31, %v59_v32 }
  0x2f   :  { %71 = vst [vmem:[%s139_s2] sm:$0xff] %v70_v33 }
  0x30   :  { %76 = vsyncpa [#allocation3], 1 }

</bundles_post_ra>
